<compile_context>
chip_gen: v7x
topology: tpu7x:2x2x1
jax: 0.10.0
libtpu: 0.0.40
codegen_flags: <defaults>
</compile_context>

<pallas_src>
import functools

import jax
import jax.numpy as jnp
from jax.experimental import pallas as pl
from jax.experimental.pallas import tpu as pltpu


_TARGET_STEP_BYTES = 8 << 20    # >=3-4 MiB of HBM traffic per grid step


def _round_up(x: int, m: int) -> int:
    return (x + m - 1) // m * m


def _sublane_rows(dtype) -> int:
    # rows per packed sublane tile: f32 -> 8, bf16 -> 16, int8 -> 32
    return max(8, 32 // jnp.dtype(dtype).itemsize)


def _padded_vmem_bytes(shape, dtype) -> int:
    """VMEM footprint of a tile, honoring (sublane, 128-lane) padding."""
    it = jnp.dtype(dtype).itemsize
    if len(shape) == 0:
        return it
    if len(shape) == 1:
        return _round_up(int(shape[0]), 128) * it
    lead = 1
    for s in shape[:-2]:
        lead *= int(s)
    sub = _round_up(int(shape[-2]), _sublane_rows(dtype))
    lane = _round_up(int(shape[-1]), 128)
    return lead * sub * lane * it


def _vmem_cap_bytes() -> int:
    """Generation-aware scoped-VMEM budget (~3/4 of physical VMEM)."""
    phys = 64 << 20                       # conservative default (v7x physical)
    try:
        phys = int(getattr(pltpu.get_tpu_info(), "vmem_capacity_bytes", phys)) or phys
    except Exception:
        pass
    return max(32 << 20, (phys * 3) // 4)


# ---------------------------------------------------------------------------
# Kernels
# ---------------------------------------------------------------------------

def _merge_unfold_kernel(x_ref, w_ref, b_ref, o_ref, *, compute_dtype):
    """Fused unfold + linear.

    x_ref: (tr, d, nw, d*c)  raw activation rows (input dtype)
    w_ref: (d, d*c, N)       projection weight, rows in (kh, (kw, c)) order
    b_ref: (1, N)            bias (f32)
    o_ref: (tr*nw, N)        merged-patch outputs, rows in (r, j) order
    """
    tr, d, nw, dc = x_ref.shape
    xt = x_ref[...]
    acc = None
    for kh in range(d):                       # d is tiny (2 or 4): unrolled
        a = xt[:, kh, :, :]                   # (tr, nw, dc)
        # Fold nw into the row axis.  nw is sublane-aligned on this path, so
        # the reshape is layout-preserving (no VMEM relayout needed).
        a = a.reshape(tr * nw, dc).astype(compute_dtype)
        p = jnp.dot(a, w_ref[kh], preferred_element_type=jnp.float32)
        acc = p if acc is None else acc + p
    o_ref[...] = (acc + b_ref[...]).astype(o_ref.dtype)


def _gemm_bias_kernel(f_ref, w_ref, b_ref, o_ref):
    """Plain GEMM + bias for the (rare) fallback path."""
    acc = jnp.dot(f_ref[...], w_ref[...], preferred_element_type=jnp.float32)
    o_ref[...] = (acc + b_ref[...]).astype(o_ref.dtype)


# ---------------------------------------------------------------------------
# Wrapper
# ---------------------------------------------------------------------------

def patch_merging(x, weight, bias, downscaling_factor, *,
                  compute_dtype=jnp.bfloat16, out_dtype=None):
    """JAX/Pallas equivalent of PatchMerging.forward.

    x:      (B, H, W, C)
    weight: (out_channels, C*d*d)  nn.Linear layout; columns in nn.Unfold's
                                   (c, kh, kw) order.
    bias:   (out_channels,)
    returns (B, H//d, W//d, out_channels)

    compute_dtype: MXU input precision (bf16 default; float32 for exact, at
                   the cost of extra HBM/MXU work).
    out_dtype:     output dtype (default x.dtype; pass bf16 to halve the
                   output write stream when downstream tolerates it).
    """
    b, h, w, c = x.shape
    d = int(downscaling_factor)
    nh, nw = h // d, w // d
    n_out = weight.shape[0]
    k_in = c * d * d
    dc = d * c
    rows = b * nh              # x-view rows; each produces nw output rows
    m = rows * nw              # total output rows
    if out_dtype is None:
        out_dtype = x.dtype

    if m == 0 or n_out == 0:
        return jnp.zeros((b, nh, nw, n_out), out_dtype)

    # nn.Unfold silently drops remainder rows/cols.
    if h != nh * d or w != nw * d:
        x = x[:, :nh * d, :nw * d, :]

    # Weight: permute nn.Unfold's (c, kh, kw) column order once (tiny) into
    # the (kh, (kw, c)) order produced by the in-kernel unfold.
    w3 = (weight.reshape(n_out, c, d, d)       # (n, c, kh, kw)
                .transpose(2, 3, 1, 0)         # (kh, kw, c, n)
                .reshape(d, dc, n_out)
                .astype(compute_dtype))
    bias2 = bias.astype(jnp.float32).reshape(1, n_out)

    cap = _vmem_cap_bytes()
    in_b = jnp.dtype(x.dtype).itemsize
    out_b = jnp.dtype(out_dtype).itemsize
    cd_b = jnp.dtype(compute_dtype).itemsize

    flops = 2 * m * k_in * n_out
    w_bytes = k_in * n_out * cd_b + n_out * 4

    # ---- fused path: needs the in-VMEM (tr, nw, dc) -> (tr*nw, dc) fold to
    # be layout-preserving, i.e. nw a multiple of the sublane tile. ----
    fused = (nw % _sublane_rows(x.dtype)) == 0

    if fused:
        def need_fused(tr_):
            return (2 * _padded_vmem_bytes((tr_, d, nw, dc), x.dtype)        # x tile
                    + 2 * _padded_vmem_bytes((tr_ * nw, n_out), out_dtype)   # out tile
                    + _padded_vmem_bytes((tr_ * nw, n_out), jnp.float32)     # f32 acc
                    + _padded_vmem_bytes((tr_ * nw, dc), compute_dtype)      # folded lhs
                    + 2 * _padded_vmem_bytes((d, dc, n_out), compute_dtype)  # weight
                    + 2 * _padded_vmem_bytes((1, n_out), jnp.float32))       # bias
        if need_fused(1) > cap:
            fused = False      # even one x-row's tiles won't fit: use 2-pass

    if fused:
        x4 = x.reshape(rows, d, nw, dc)        # pure view: no HBM copy

        # Row tile from the per-step HBM byte target, shrunk to fit VMEM.
        step_row_bytes = d * nw * dc * in_b + nw * n_out * out_b
        tr = max(1, min(rows, _TARGET_STEP_BYTES // max(1, step_row_bytes)))
        while tr > 1 and need_fused(tr) > cap:
            tr = max(1, tr // 2)
        vmem_limit = int(min(cap, max(need_fused(tr) + (6 << 20), 32 << 20)))

        out = pl.pallas_call(
            functools.partial(_merge_unfold_kernel, compute_dtype=compute_dtype),
            out_shape=jax.ShapeDtypeStruct((m, n_out), out_dtype),
            grid_spec=pltpu.PrefetchScalarGridSpec(
                num_scalar_prefetch=0,
                grid=(pl.cdiv(rows, tr),),
                in_specs=[
                    pl.BlockSpec((tr, d, nw, dc), lambda i: (i, 0, 0, 0)),
                    pl.BlockSpec((d, dc, n_out), lambda i: (0, 0, 0)),
                    pl.BlockSpec((1, n_out), lambda i: (0, 0)),
                ],
                out_specs=pl.BlockSpec((tr * nw, n_out), lambda i: (i, 0)),
            ),
            compiler_params=pltpu.CompilerParams(
                dimension_semantics=("parallel",),
                vmem_limit_bytes=vmem_limit),
            cost_estimate=pl.CostEstimate(
                flops=flops, transcendentals=0,
                bytes_accessed=m * k_in * in_b + m * n_out * out_b + w_bytes),
        )(x4, w3, bias2)
        return out.reshape(b, nh, nw, n_out)

    # ---- fallback: materialize the (kh, kw, c)-ordered unfold once, then a
    # plain GEMM kernel (previous, proven scheme). ----
    feat = (x.reshape(b, nh, d, nw, d, c)
              .transpose(0, 1, 3, 2, 4, 5)      # (b, i, j, kh, kw, c)
              .reshape(m, k_in)
              .astype(compute_dtype))
    w2 = w3.reshape(k_in, n_out)                # rows in (kh, kw, c) order too

    def need_gemm(tm_):
        return (2 * _padded_vmem_bytes((tm_, k_in), compute_dtype)
                + 2 * _padded_vmem_bytes((tm_, n_out), out_dtype)
                + _padded_vmem_bytes((tm_, n_out), jnp.float32)
                + 2 * _padded_vmem_bytes((k_in, n_out), compute_dtype)
                + 2 * _padded_vmem_bytes((1, n_out), jnp.float32))

    step_row_bytes = k_in * cd_b + n_out * out_b
    if m <= 8:
        tm = m
    else:
        tm = max(8, min(m, _TARGET_STEP_BYTES // max(1, step_row_bytes)))
        if tm < m:
            tm = max(8, (tm // 8) * 8)
        while tm > 8 and need_gemm(tm) > cap:
            tm = max(8, ((tm // 2) // 8) * 8)
    vmem_limit = int(min(cap, max(need_gemm(tm) + (6 << 20), 32 << 20)))

    out = pl.pallas_call(
        _gemm_bias_kernel,
        out_shape=jax.ShapeDtypeStruct((m, n_out), out_dtype),
        grid_spec=pltpu.PrefetchScalarGridSpec(
            num_scalar_prefetch=0,
            grid=(pl.cdiv(m, tm),),
            in_specs=[
                pl.BlockSpec((tm, k_in), lambda i: (i, 0)),
                pl.BlockSpec((k_in, n_out), lambda i: (0, 0)),
                pl.BlockSpec((1, n_out), lambda i: (0, 0)),
            ],
            out_specs=pl.BlockSpec((tm, n_out), lambda i: (i, 0)),
        ),
        compiler_params=pltpu.CompilerParams(
            dimension_semantics=("parallel",),
            vmem_limit_bytes=vmem_limit),
        cost_estimate=pl.CostEstimate(
            flops=flops, transcendentals=0,
            bytes_accessed=m * k_in * cd_b + m * n_out * out_b + w_bytes),
    )(feat, w2, bias2)
    return out.reshape(b, nh, nw, n_out)


# ---------------------------------------------------------------------------
# Self-test
# ---------------------------------------------------------------------------

if __name__ == "__main__":
    def _reference(x, weight, bias, d, cast_dtype=None):
        b_, h_, w_, c_ = x.shape
        nh_, nw_ = h_ // d, w_ // d
        xc = x[:, :nh_ * d, :nw_ * d, :]
        # nn.Unfold channel order is (c, kh, kw)
        feat = (xc.reshape(b_, nh_, d, nw_, d, c_)
                  .transpose(0, 1, 3, 5, 2, 4)
                  .reshape(b_, nh_, nw_, c_ * d * d))
        if cast_dtype is not None:
            feat = feat.astype(cast_dtype).astype(jnp.float32)
            weight = weight.astype(cast_dtype).astype(jnp.float32)
        return feat @ weight.T + bias

    def _run_case(name, key, *, B, H, W, C, d, n_out):
        k_in = C * d * d
        kx, kw_, kb = jax.random.split(key, 3)
        x = jax.random.normal(kx, (B, H, W, C), dtype=jnp.float32)
        bound = 1.0 / (k_in ** 0.5)
        weight = jax.random.uniform(kw_, (n_out, k_in), minval=-bound,
                                    maxval=bound, dtype=jnp.float32)
        bias = jax.random.uniform(kb, (n_out,), minval=-bound, maxval=bound,
                                  dtype=jnp.float32)

        fn = jax.jit(functools.partial(patch_merging, downscaling_factor=d))
        out = jax.block_until_ready(fn(x, weight, bias))

        nh_, nw_ = H // d, W // d
        assert out.shape == (B, nh_, nw_, n_out), (name, out.shape)
        out32 = jnp.asarray(out, jnp.float32)
        err_m = float(jnp.max(jnp.abs(
            out32 - _reference(x, weight, bias, d, cast_dtype=jnp.bfloat16))))
        err_f = float(jnp.max(jnp.abs(out32 - _reference(x, weight, bias, d))))
        assert err_m < 5e-3, (name, "bf16-matched", err_m)
        assert err_f < 1e-1, (name, "f32", err_f)

    key = jax.random.PRNGKey(0)
    k_fused, k_fallback = jax.random.split(key)
    # fused (copy-free in-kernel unfold) path: nw = 8 is sublane aligned
    _run_case("fused", k_fused, B=2, H=16, W=16, C=4, d=2, n_out=32)
    # fallback (two-pass) path: nw = 6 is not sublane aligned
    _run_case("fallback", k_fallback, B=2, H=12, W=12, C=4, d=2, n_out=32)
    print("KERNEL_OK")
</pallas_src>

<mosaic_0001>
module attributes {stable_mosaic.version = 11 : i64} {
  func.func @_merge_unfold_kernel(%arg0: i32, %arg1: memref<16x2x8x8xf32, #tpu.memory_space<vmem>>, %arg2: memref<2x8x32xbf16, #tpu.memory_space<vmem>>, %arg3: memref<1x32xf32, #tpu.memory_space<vmem>>, %arg4: memref<128x32xf32, #tpu.memory_space<vmem>>) attributes {dimension_semantics = [#tpu.dimension_semantics<parallel>], iteration_bounds = array<i64: 1>, scalar_prefetch = 0 : i64, scratch_operands = 0 : i64, tpu.core_type = #tpu.core_type<tc>, window_params = [{transform_indices = @transform_0, window_bounds = array<i64: 16, 2, 8, 8>}, {pipeline_mode = #tpu.pipeline_mode<synchronous>, transform_indices = @transform_1, window_bounds = array<i64: 2, 8, 32>}, {pipeline_mode = #tpu.pipeline_mode<synchronous>, transform_indices = @transform_2, window_bounds = array<i64: 1, 32>}, {transform_indices = @transform_3, window_bounds = array<i64: 128, 32>}]} {
    %c0 = arith.constant 0 : index
    %c0_0 = arith.constant 0 : index
    %c0_1 = arith.constant 0 : index
    %c0_2 = arith.constant 0 : index
    %0 = vector.load %arg1[%c0, %c0_0, %c0_1, %c0_2] : memref<16x2x8x8xf32, #tpu.memory_space<vmem>>, vector<16x2x8x8xf32>
    %1 = vector.extract_strided_slice %0 {offsets = [0, 0, 0, 0], sizes = [16, 1, 8, 8], strides = [1, 1, 1, 1]} : vector<16x2x8x8xf32> to vector<16x1x8x8xf32>
    %2 = vector.shape_cast %1 : vector<16x1x8x8xf32> to vector<16x8x8xf32>
    %3 = vector.shape_cast %2 : vector<16x8x8xf32> to vector<128x8xf32>
    %4 = arith.truncf %3 : vector<128x8xf32> to vector<128x8xbf16>
    %c0_3 = arith.constant 0 : index
    %c0_4 = arith.constant 0 : index
    %c0_5 = arith.constant 0 : index
    %5 = vector.load %arg2[%c0_3, %c0_4, %c0_5] : memref<2x8x32xbf16, #tpu.memory_space<vmem>>, vector<1x8x32xbf16>
    %6 = vector.shape_cast %5 : vector<1x8x32xbf16> to vector<8x32xbf16>
    %cst = arith.constant dense<0.000000e+00> : vector<128x32xf32>
    %7 = tpu.matmul %4, %6, %cst {dimension_numbers = #tpu.dot_dimension_numbers<[1], [0], [0], [1], [0, 0, 1, 1], [], []>} : vector<128x8xbf16>, vector<8x32xbf16>, vector<128x32xf32> -> vector<128x32xf32>
    %8 = vector.extract_strided_slice %0 {offsets = [0, 1, 0, 0], sizes = [16, 1, 8, 8], strides = [1, 1, 1, 1]} : vector<16x2x8x8xf32> to vector<16x1x8x8xf32>
    %9 = vector.shape_cast %8 : vector<16x1x8x8xf32> to vector<16x8x8xf32>
    %10 = vector.shape_cast %9 : vector<16x8x8xf32> to vector<128x8xf32>
    %11 = arith.truncf %10 : vector<128x8xf32> to vector<128x8xbf16>
    %c1 = arith.constant 1 : index
    %c0_6 = arith.constant 0 : index
    %c0_7 = arith.constant 0 : index
    %12 = vector.load %arg2[%c1, %c0_6, %c0_7] : memref<2x8x32xbf16, #tpu.memory_space<vmem>>, vector<1x8x32xbf16>
    %13 = vector.shape_cast %12 : vector<1x8x32xbf16> to vector<8x32xbf16>
    %cst_8 = arith.constant dense<0.000000e+00> : vector<128x32xf32>
    %14 = tpu.matmul %11, %13, %cst_8 {dimension_numbers = #tpu.dot_dimension_numbers<[1], [0], [0], [1], [0, 0, 1, 1], [], []>} : vector<128x8xbf16>, vector<8x32xbf16>, vector<128x32xf32> -> vector<128x32xf32>
    %15 = arith.addf %7, %14 : vector<128x32xf32>
    %c0_9 = arith.constant 0 : index
    %c0_10 = arith.constant 0 : index
    %16 = vector.load %arg3[%c0_9, %c0_10] : memref<1x32xf32, #tpu.memory_space<vmem>>, vector<1x32xf32>
    %17 = vector.broadcast %16 : vector<1x32xf32> to vector<128x32xf32>
    %18 = arith.addf %15, %17 : vector<128x32xf32>
    %c0_11 = arith.constant 0 : index
    %c0_12 = arith.constant 0 : index
    %19 = vector.load %arg4[%c0_11, %c0_12] : memref<128x32xf32, #tpu.memory_space<vmem>>, vector<128x32xf32>
    tpu.vector_store %arg4[%c0_11, %c0_12], %18 {strides = array<i32>} : memref<128x32xf32, #tpu.memory_space<vmem>>, vector<128x32xf32>,
    return
  }
  func.func @transform_0(%arg0: i32) -> (i32, i32, i32, i32) {
    %c0_i32 = arith.constant 0 : i32
    %c0_i32_0 = arith.constant 0 : i32
    %c0_i32_1 = arith.constant 0 : i32
    %c0_i32_2 = arith.constant 0 : i32
    return %arg0, %c0_i32, %c0_i32_0, %c0_i32_1 : i32, i32, i32, i32
  }
  func.func @transform_1(%arg0: i32) -> (i32, i32, i32) {
    %c0_i32 = arith.constant 0 : i32
    %c0_i32_0 = arith.constant 0 : i32
    %c0_i32_1 = arith.constant 0 : i32
    %c0_i32_2 = arith.constant 0 : i32
    return %c0_i32, %c0_i32_0, %c0_i32_1 : i32, i32, i32
  }
  func.func @transform_2(%arg0: i32) -> (i32, i32) {
    %c0_i32 = arith.constant 0 : i32
    %c0_i32_0 = arith.constant 0 : i32
    %c0_i32_1 = arith.constant 0 : i32
    return %c0_i32, %c0_i32_0 : i32, i32
  }
  func.func @transform_3(%arg0: i32) -> (i32, i32) {
    %c0_i32 = arith.constant 0 : i32
    %c0_i32_0 = arith.constant 0 : i32
    return %arg0, %c0_i32 : i32, i32
  }
}

</mosaic_0001>

<bundles_post_ra>
// kernel: patch_merging.1
= control target key start
LH: loop header
LB: loop body
LE: loop exit
PB: predicated region body
PF: predicated region fallthrough
CT: control target
= control target key end

     0   :  { %vm92_vm0 = vcmask 1043456   ;;  %vm67_vm1 = vcmask 64512   ;;  %s680_s0 = inlined_call_operand.vmem [shape: f32[16,2,8,8], index: 0, kind: input, shape index: {}]   ;;  %s681_s1 = inlined_call_operand.vmem [shape: bf16[2,8,32], index: 1, kind: input, shape index: {}]   ;;  %s682_s2 = inlined_call_operand.vmem [shape: f32[1,32], index: 2, kind: input, shape index: {}]   ;;  %s683_s3 = inlined_call_operand.hbm [shape: f32[128,32], index: 3, kind: output, shape index: {}]  }
   0x1   :  { %v373_v0 = vld [vmem:[%s681_s1 + $0x4] sm:$0xf]  ;;  %v56_v1 = vld [vmem:[%s681_s1] sm:$0xf]  ;;  %v17_v2 = vld [vmem:[%s680_s0 + $0x8] sm:$0xff] }
   0x2   :  { %461 = vmatprep.subr.msk.bf16.mxu1 %vm92_vm0, %v373_v0  ;;  %462 = vmatprep.subr.msk.bf16.mxu0 %vm92_vm0, %v56_v1  ;;  %v94_v3 = vsel %vm92_vm0, %v373_v0, 0  ;;  %v218_v4 = vsel %vm92_vm0, %v56_v1, 0  ;;  %v19_v5 = vld [vmem:[%s680_s0 + $0x18] sm:$0xff]  ;;  %v16_v6 = vld [vmem:[%s680_s0] sm:$0xff]  ;;  %v18_v7 = vld [vmem:[%s680_s0 + $0x10] sm:$0xff] }
   0x3   :  { %410 = vmatpush3.bf16.msra.mxu1 %v94_v3  ;;  %428 = vmatpush3.bf16.msra.mxu0 %v218_v4  ;;  %v57_v8 = vpack.c.bf16 %v19_v5, %v17_v2  ;;  %v48_v9 = vpack.c.bf16 %v18_v7, %v16_v6  ;;  %v21_v10 = vld [vmem:[%s680_s0 + $0x28] sm:$0xff]  ;;  %v23_v11 = vld [vmem:[%s680_s0 + $0x38] sm:$0xff]  ;;  %v20_v12 = vld [vmem:[%s680_s0 + $0x20] sm:$0xff] }
   0x4   :  { %v58_v13 = vpack.c.bf16 %v23_v11, %v21_v10  ;;  %v22_v14 = vld [vmem:[%s680_s0 + $0x30] sm:$0xff]  ;;  %v25_v15 = vld [vmem:[%s680_s0 + $0x48] sm:$0xff]  ;;  %v27_v16 = vld [vmem:[%s680_s0 + $0x58] sm:$0xff] }
   0x5   :  { %411 = vmatprep.mubr.msk.bf16.mxu1 %vm67_vm1, %v57_v8  ;;  %429 = vmatprep.mubr.msk.bf16.mxu0 %vm67_vm1, %v48_v9  ;;  %v49_v17 = vpack.c.bf16 %v22_v14, %v20_v12  ;;  %v59_v18 = vpack.c.bf16 %v27_v16, %v25_v15  ;;  %v24_v19 = vld [vmem:[%s680_s0 + $0x40] sm:$0xff]  ;;  %v26_v20 = vld [vmem:[%s680_s0 + $0x50] sm:$0xff]  ;;  %v29_v22 = vld [vmem:[%s680_s0 + $0x68] sm:$0xff] }
   0x6   :  { %412 = vmatmul.mubr.msk.bf16.vlgmr.msra.gmra.mrb[0].mxu1 %vm67_vm1, %v58_v13  ;;  %v50_v21 = vpack.c.bf16 %v26_v20, %v24_v19  ;;  %v31_v23 = vld [vmem:[%s680_s0 + $0x78] sm:$0xff]  ;;  %v28_v24 = vld [vmem:[%s680_s0 + $0x60] sm:$0xff]  ;;  %v30_v25 = vld [vmem:[%s680_s0 + $0x70] sm:$0xff] }
   0x7   :  { %430 = vmatmul.mubr.msk.bf16.vlgmr.msra.gmra.mrb[0].mxu0 %vm67_vm1, %v49_v17  ;;  %415 = vmatprep.mubr.msk.bf16.mxu1 %vm67_vm1, %v59_v18  ;;  %v33_v26 = vld [vmem:[%s680_s0 + $0x88] sm:$0xff]  ;;  %v35_v27 = vld [vmem:[%s680_s0 + $0x98] sm:$0xff]  ;;  %v32_v28 = vld [vmem:[%s680_s0 + $0x80] sm:$0xff]  ;;  %v60_v30 = vpack.c.bf16 %v31_v23, %v29_v22  ;;  %v51_v31 = vpack.c.bf16 %v30_v25, %v28_v24 }
   0x8   :  { %433 = vmatprep.mubr.msk.bf16.mxu0 %vm67_vm1, %v50_v21  ;;  %v34_v29 = vld [vmem:[%s680_s0 + $0x90] sm:$0xff]  ;;  %v61_v32 = vpack.c.bf16 %v35_v27, %v33_v26 }
   0x9   :  { %v52_v33 = vpack.c.bf16 %v34_v29, %v32_v28 }
   0xa   :  { %8 = vsyncpa [#allocation3], 0  ;;  %v37_v34 = vld [vmem:[%s680_s0 + $0xa8] sm:$0xff]  ;;  %v39_v35 = vld [vmem:[%s680_s0 + $0xb8] sm:$0xff]  ;;  %vm340_vm2 = vcmask 261120  }
   0xb   :  { %v36_v36 = vld [vmem:[%s680_s0 + $0xa0] sm:$0xff]  ;;  %v38_v37 = vld [vmem:[%s680_s0 + $0xb0] sm:$0xff]  ;;  %v41_v38 = vld [vmem:[%s680_s0 + $0xc8] sm:$0xff]  ;;  %v62_v42 = vpack.c.bf16 %v39_v35, %v37_v34 }
   0xc   :  { %v43_v39 = vld [vmem:[%s680_s0 + $0xd8] sm:$0xff]  ;;  %v40_v40 = vld [vmem:[%s680_s0 + $0xc0] sm:$0xff]  ;;  %v42_v41 = vld [vmem:[%s680_s0 + $0xd0] sm:$0xff]  ;;  %v53_v43 = vpack.c.bf16 %v38_v37, %v36_v36 }
   0xd   :  { %v63_v44 = vpack.c.bf16 %v43_v39, %v41_v38  ;;  %v54_v45 = vpack.c.bf16 %v42_v41, %v40_v40  ;;  %v45_v46 = vld [vmem:[%s680_s0 + $0xe8] sm:$0xff]  ;;  %v47_v47 = vld [vmem:[%s680_s0 + $0xf8] sm:$0xff]  ;;  %v44_v48 = vld [vmem:[%s680_s0 + $0xe0] sm:$0xff] }
   0xe   :  { %416 = vmatmul.mubr.msk.bf16.gmra.mrb[4].mxu1 %vm67_vm1, %v60_v30  ;;  %v46_v49 = vld [vmem:[%s680_s0 + $0xf0] sm:$0xff]  ;;  %v64_v50 = vpack.c.bf16 %v47_v47, %v45_v46  ;;  %v634_v54 = vld [vmem:[%s682_s2] ss:$0 sm:$0xff]  ;;  %s490_s0 = smov [#allocation2]  }
   0xf   :  { %434 = vmatmul.mubr.msk.bf16.gmra.mrb[4].mxu0 %vm67_vm1, %v51_v31  ;;  %419 = vmatprep.mubr.msk.bf16.mxu1 %vm67_vm1, %v61_v32  ;;  %v55_v51 = vpack.c.bf16 %v46_v49, %v44_v48  ;;  %s362_s2 = sshll.u32 %s490_s0, 4  ;;  %s363_s2 = int_to_ptr.vmem [resolvable:$true] %s362_s2 }
  0x10   :  { %437 = vmatprep.mubr.msk.bf16.mxu0 %vm67_vm1, %v52_v33  ;;  %s466_s25 = scalar_lea.vmem %s363_s2, 2048  ;;  %p471_p1 = scmp.lt.s32.totalorder %s363_s2, %s363_s2 }
  0x11   :  { %p467_p0 = scmp.ne.s32.totalorder %s363_s2, %s466_s25  ;;  %p472_p2 = scmp.lt.s32.totalorder %s466_s25, %s466_s25 }
  0x13   :  { %p473_p3 = por %p472_p2, %p471_p1 }
  0x15   :  { %p474_p4 = pnand %p473_p3, %p467_p0 }
  0x16   :  { %420 = vmatmul.mubr.msk.bf16.gmra.mrb[8].mxu1 %vm67_vm1, %v62_v42 }
  0x17   :  { %438 = vmatmul.mubr.msk.bf16.gmra.mrb[8].mxu0 %vm67_vm1, %v53_v43  ;;  %423 = vmatprep.mubr.msk.bf16.mxu1 %vm67_vm1, %v63_v44 }
  0x18   :  { %441 = vmatprep.mubr.msk.bf16.mxu0 %vm67_vm1, %v54_v45 }
  0x1e   :  { %424 = vmatmul.mubr.msk.bf16.gmra.mrb[12].mxu1 %vm67_vm1, %v64_v50 }
  0x1f   :  { %442 = vmatmul.mubr.msk.bf16.gmra.mrb[12].mxu0 %vm67_vm1, %v55_v51 }
  0xd9   :  { %v413_v52 = vpop.f32.mrb[0].mxu1 }
  0xda   :  { %v431_v53 = vpop.f32.mrb[0].mxu0  ;;  %v130_v55 = vpop.f32.mrb[1].mxu1 }
  0xdb   :  { %v263_v56 = vadd.f32 %v431_v53, %v413_v52  ;;  %v254_v57 = vpop.f32.mrb[1].mxu0  ;;  %v414_v58 = vpop.f32.mrb[2].mxu1 }
  0xdc   :  { %v255_v59 = vadd.f32 %v254_v57, %v130_v55  ;;  %v432_v60 = vpop.f32.mrb[2].mxu0  ;;  %v133_v61 = vpop.f32.mrb[3].mxu1 }
  0xdd   :  { %v326_v62 = vadd.f32 %v634_v54, %v263_v56  ;;  %v266_v63 = vadd.f32 %v432_v60, %v414_v58  ;;  %v257_v0 = vpop.f32.mrb[3].mxu0 }
  0xde   :  { %v324_v1 = vadd.f32 %v634_v54, %v255_v59  ;;  %v258_v2 = vadd.f32 %v257_v0, %v133_v61 }
  0xdf   :  { %343 = vst.msk [vmem:[#allocation2 + $0x10] sm:$0xff] %vm340_vm2, %v326_v62  ;;  %v327_v3 = vadd.f32 %v634_v54, %v266_v63 }
  0xe0   :  { %341 = vst.msk [vmem:[#allocation2] sm:$0xff] %vm340_vm2, %v324_v1  ;;  %v325_v4 = vadd.f32 %v634_v54, %v258_v2 }
  0xe1   :  { %344 = vst.msk [vmem:[#allocation2 + $0x18] sm:$0xff] %vm340_vm2, %v327_v3  ;;  %v417_v5 = vpop.f32.mrb[4].mxu1 }
  0xe2   :  { %342 = vst.msk [vmem:[#allocation2 + $0x8] sm:$0xff] %vm340_vm2, %v325_v4  ;;  %v435_v6 = vpop.f32.mrb[4].mxu0  ;;  %v146_v7 = vpop.f32.mrb[5].mxu1 }
  0xe3   :  { %v279_v8 = vadd.f32 %v435_v6, %v417_v5  ;;  %v270_v9 = vpop.f32.mrb[5].mxu0  ;;  %v418_v10 = vpop.f32.mrb[6].mxu1 }
  0xe4   :  { %v271_v11 = vadd.f32 %v270_v9, %v146_v7  ;;  %v436_v12 = vpop.f32.mrb[6].mxu0  ;;  %v149_v13 = vpop.f32.mrb[7].mxu1 }
  0xe5   :  { %v330_v14 = vadd.f32 %v634_v54, %v279_v8  ;;  %v282_v15 = vadd.f32 %v436_v12, %v418_v10  ;;  %v273_v16 = vpop.f32.mrb[7].mxu0 }
  0xe6   :  { %v328_v17 = vadd.f32 %v634_v54, %v271_v11  ;;  %v274_v18 = vadd.f32 %v273_v16, %v149_v13 }
  0xe7   :  { %347 = vst.msk [vmem:[#allocation2 + $0x30] sm:$0xff] %vm340_vm2, %v330_v14  ;;  %v331_v19 = vadd.f32 %v634_v54, %v282_v15 }
  0xe8   :  { %345 = vst.msk [vmem:[#allocation2 + $0x20] sm:$0xff] %vm340_vm2, %v328_v17  ;;  %v329_v20 = vadd.f32 %v634_v54, %v274_v18 }
  0xe9   :  { %348 = vst.msk [vmem:[#allocation2 + $0x38] sm:$0xff] %vm340_vm2, %v331_v19  ;;  %v421_v21 = vpop.f32.mrb[8].mxu1 }
  0xea   :  { %346 = vst.msk [vmem:[#allocation2 + $0x28] sm:$0xff] %vm340_vm2, %v329_v20  ;;  %v439_v22 = vpop.f32.mrb[8].mxu0  ;;  %v162_v23 = vpop.f32.mrb[9].mxu1 }
  0xeb   :  { %v295_v24 = vadd.f32 %v439_v22, %v421_v21  ;;  %v286_v25 = vpop.f32.mrb[9].mxu0  ;;  %v422_v26 = vpop.f32.mrb[10].mxu1 }
  0xec   :  { %v287_v27 = vadd.f32 %v286_v25, %v162_v23  ;;  %v440_v28 = vpop.f32.mrb[10].mxu0  ;;  %v165_v29 = vpop.f32.mrb[11].mxu1 }
  0xed   :  { %v334_v30 = vadd.f32 %v634_v54, %v295_v24  ;;  %v298_v31 = vadd.f32 %v440_v28, %v422_v26  ;;  %v289_v32 = vpop.f32.mrb[11].mxu0 }
  0xee   :  { %v332_v33 = vadd.f32 %v634_v54, %v287_v27  ;;  %v290_v34 = vadd.f32 %v289_v32, %v165_v29 }
  0xef   :  { %351 = vst.msk [vmem:[#allocation2 + $0x50] sm:$0xff] %vm340_vm2, %v334_v30  ;;  %v335_v35 = vadd.f32 %v634_v54, %v298_v31 }
  0xf0   :  { %349 = vst.msk [vmem:[#allocation2 + $0x40] sm:$0xff] %vm340_vm2, %v332_v33  ;;  %v333_v36 = vadd.f32 %v634_v54, %v290_v34 }
  0xf1   :  { %352 = vst.msk [vmem:[#allocation2 + $0x58] sm:$0xff] %vm340_vm2, %v335_v35  ;;  %v425_v37 = vpop.f32.mrb[12].mxu1 }
  0xf2   :  { %350 = vst.msk [vmem:[#allocation2 + $0x48] sm:$0xff] %vm340_vm2, %v333_v36  ;;  %v443_v38 = vpop.f32.mrb[12].mxu0  ;;  %v178_v39 = vpop.f32.mrb[13].mxu1 }
  0xf3   :  { %v311_v40 = vadd.f32 %v443_v38, %v425_v37  ;;  %v302_v41 = vpop.f32.mrb[13].mxu0  ;;  %v426_v42 = vpop.f32.mrb[14].mxu1 }
  0xf4   :  { %v303_v43 = vadd.f32 %v302_v41, %v178_v39  ;;  %v444_v44 = vpop.f32.mrb[14].mxu0  ;;  %v181_v45 = vpop.f32.mrb[15].mxu1 }
  0xf5   :  { %v338_v46 = vadd.f32 %v634_v54, %v311_v40  ;;  %v314_v47 = vadd.f32 %v444_v44, %v426_v42  ;;  %v305_v48 = vpop.f32.mrb[15].mxu0 }
  0xf6   :  { %v336_v49 = vadd.f32 %v634_v54, %v303_v43  ;;  %v306_v50 = vadd.f32 %v305_v48, %v181_v45 }
  0xf7   :  { %355 = vst.msk [vmem:[#allocation2 + $0x70] sm:$0xff] %vm340_vm2, %v338_v46  ;;  %v339_v51 = vadd.f32 %v634_v54, %v314_v47 }
  0xf8   :  { %353 = vst.msk [vmem:[#allocation2 + $0x60] sm:$0xff] %vm340_vm2, %v336_v49  ;;  %v337_v52 = vadd.f32 %v634_v54, %v306_v50 }
  0xf9   :  { %356 = vst.msk [vmem:[#allocation2 + $0x78] sm:$0xff] %vm340_vm2, %v339_v51 }
  0xfa   :  { %354 = vst.msk [vmem:[#allocation2 + $0x68] sm:$0xff] %vm340_vm2, %v337_v52 }
  0xfb   :  { %477 = shalt.err (!%p474_p4)
}
  0xfc   :  { %s478_s28 = scalar_lea.hbm %s683_s3, 2048 }
  0xfd   :  { %p479_p5 = scmp.ne.s32.totalorder %s683_s3, %s478_s28  ;;  %p482_p6 = scmp.lt.u32.totalorder %s478_s28, %s683_s3 }
  0xff   :  { %p484_p7 = pnand %p482_p6, %p479_p5 }
 0x101   :  { %487 = shalt.err (!%p484_p7)
}
 0x102   :  { %s491_s6 = smov 128   ;;  %s492_s7 = smov 8  }
 0x103   :  { %368 = dma.vmem_to_hbm [thread:$0]  %s363_s2, 2048, %s683_s3, [#allocation3], %s491_s6, %s491_s6, %s492_s7  }
 0x104   :  { %488 = dma.done.wait [#allocation3], 2048  }
 0x105   :  { %489 = vsyncadd [#allocation3], 4294965248 }
 0x106   :  { %372 = vsyncpa [#allocation3], 1 }

</bundles_post_ra>
